<compile_context>
chip_gen: v5e
topology: v5e:2x2
jax: 0.10.0
libtpu: 0.0.40
codegen_flags: <defaults>
</compile_context>

<pallas_src>
import functools

import jax
import jax.numpy as jnp
from jax.experimental import pallas as pl
from jax.experimental.pallas import tpu as pltpu

LANE = 128
_SUBLANE = 8
_DEFAULT_TILE_ROWS = 8192   # rows per grid step: 8192*128*4 B = 4 MiB DMA tile
_CHUNK_ROWS = 512           # in-kernel compute chunk: 256 KiB (bounds live VMEM temps)
_NUM_CORES = 2              # leading "parallel" grid axis (both TCs on v7x)
_PAD_NEG = -1e30            # softplus(_PAD_NEG) == 0 exactly -> no masking needed


def _span_loss_kernel(x_ref, out_ref, *, chunk_rows):
    """Streaming softplus + reduce.

    x_ref   : (tile_rows, 128) f32 block of x = (1-2y)*(l1-l0)
    out_ref : (8, 128) f32 per-core partial-sum block, revisited across the
              'arbitrary' grid axis (accumulator pattern).
    """
    i = pl.program_id(1)

    @pl.when(i == 0)
    def _init():
        out_ref[...] = jnp.zeros_like(out_ref)

    n_chunks = x_ref.shape[0] // chunk_rows
    # Static inner loop over modest chunks: keeps elementwise intermediates
    # small while the per-grid-step DMA tile stays large.
    for j in range(n_chunks):
        x = x_ref[j * chunk_rows:(j + 1) * chunk_rows, :]
        # 2-class CE, numerically stable softplus form:
        #   loss = softplus(x) = max(x, 0) + log(1 + exp(-|x|))
        # (exp + log = 2 EUP transcendentals / element — the floor for exact CE.
        #  log1p would be marginally more accurate; plain log is used for
        #  guaranteed Mosaic lowering and is well within tolerance here.)
        loss = jnp.maximum(x, 0.0) + jnp.log(1.0 + jnp.exp(-jnp.abs(x)))
        # (chunk_rows,128) -> (chunk_rows/8, 8, 128) is a layout-free reshape
        # (sublane groups of 8 are already vreg tiles); axis-0 sum is pure VPU.
        out_ref[...] += loss.reshape(-1, _SUBLANE, LANE).sum(axis=0)


def span_loss(span_logits, span_label, seq_mask, *, tile_rows=_DEFAULT_TILE_ROWS):
    """Pallas equivalent of PyTorch Span_loss.forward."""
    batch = seq_mask.shape[0]
    n = int(span_label.size)                 # = B * S * S two-class decisions

    # Single fused, contiguous host pass (no strided class-major repack):
    #   CE(l, y) = softplus((1 - 2y) * (l1 - l0))
    l = span_logits.reshape(-1, 2).astype(jnp.float32)
    y = span_label.reshape(-1).astype(jnp.float32)
    x = (1.0 - 2.0 * y) * (l[:, 1] - l[:, 0])

    # Tiling. Pad (fused into the pass above) with a large negative value so
    # padded elements contribute exactly zero loss.
    rows_needed = -(-n // LANE)
    if rows_needed <= _CHUNK_ROWS:
        tile_rows = max(_SUBLANE, -(-rows_needed // _SUBLANE) * _SUBLANE)
        chunk_rows = tile_rows
    else:
        tile_rows = min(tile_rows, -(-rows_needed // _CHUNK_ROWS) * _CHUNK_ROWS)
        chunk_rows = _CHUNK_ROWS
    num_tiles = -(-rows_needed // tile_rows)
    tiles_per_core = -(-num_tiles // _NUM_CORES)
    rows_pad = _NUM_CORES * tiles_per_core * tile_rows
    pad = rows_pad * LANE - n
    x = jnp.pad(x, (0, pad), constant_values=_PAD_NEG).reshape(rows_pad, LANE)

    kernel = functools.partial(_span_loss_kernel, chunk_rows=chunk_rows)

    elems = rows_pad * LANE
    out = pl.pallas_call(
        kernel,
        out_shape=jax.ShapeDtypeStruct((_NUM_CORES * _SUBLANE, LANE), jnp.float32),
        grid=(_NUM_CORES, tiles_per_core),
        in_specs=[
            pl.BlockSpec((tile_rows, LANE),
                         lambda c, i: (c * tiles_per_core + i, 0)),
        ],
        out_specs=pl.BlockSpec((_SUBLANE, LANE), lambda c, i: (c, 0)),
        compiler_params=pltpu.CompilerParams(
            dimension_semantics=("parallel", "arbitrary")),
        cost_estimate=pl.CostEstimate(
            flops=6 * elems,
            transcendentals=2 * elems,
            bytes_accessed=4 * elems + 4 * _NUM_CORES * _SUBLANE * LANE),
    )(x)

    # Tiny final reduce (2*8*128 partials) + 1/batch scale done by XLA.
    return jnp.sum(out) / batch


def _reference(span_logits, span_label, seq_mask):
    """Pure-JAX reference matching torch.nn.CrossEntropyLoss(reduction='none')."""
    logits = span_logits.reshape(-1, 2).astype(jnp.float32)
    labels = span_label.reshape(-1)
    logz = jax.scipy.special.logsumexp(logits, axis=-1)
    picked = jnp.take_along_axis(logits, labels[:, None], axis=-1)[:, 0]
    return jnp.sum(logz - picked) / seq_mask.shape[0]


if __name__ == "__main__":
    key = jax.random.PRNGKey(0)
    k1, k2 = jax.random.split(key)

    B, S = 2, 8
    span_logits = jax.random.normal(k1, (B, S, S, 2), dtype=jnp.float32)
    span_label = jax.random.randint(k2, (B, S, S), 0, 2, dtype=jnp.int32)
    # NOTE: like the PyTorch module, seq_mask is only used for its leading dim.
    seq_mask = jnp.ones((B, S), dtype=jnp.float32)

    out = span_loss(span_logits, span_label, seq_mask)
    jax.block_until_ready(out)

    ref = _reference(span_logits, span_label, seq_mask)
    assert jnp.allclose(out, ref, rtol=1e-5, atol=1e-5), (out, ref)

    print("KERNEL_OK")
</pallas_src>

<mosaic_0001>
module attributes {stable_mosaic.version = 11 : i64} {
  func.func @_span_loss_kernel(%arg0: i32, %arg1: i32, %arg2: memref<8x128xf32, #tpu.memory_space<vmem>>, %arg3: memref<8x128xf32, #tpu.memory_space<vmem>>) attributes {dimension_semantics = [#tpu.dimension_semantics<parallel>, #tpu.dimension_semantics<arbitrary>], iteration_bounds = array<i64: 2, 1>, scalar_prefetch = 0 : i64, scratch_operands = 0 : i64, tpu.core_type = #tpu.core_type<tc>, window_params = [{transform_indices = @transform_0, window_bounds = array<i64: 8, 128>}, {transform_indices = @transform_1, window_bounds = array<i64: 8, 128>}]} {
    %c0_i32 = arith.constant 0 : i32
    %0 = arith.cmpi eq, %arg1, %c0_i32 : i32
    %1 = arith.extui %0 : i1 to i32
    %c0_i32_0 = arith.constant 0 : i32
    %2 = arith.cmpi ne, %1, %c0_i32_0 : i32
    scf.if %2 {
      %cst_9 = arith.constant 0.000000e+00 : f32
      %19 = vector.broadcast %cst_9 : f32 to vector<8x128xf32>
      %c0_10 = arith.constant 0 : index
      %c0_11 = arith.constant 0 : index
      %20 = vector.load %arg3[%c0_10, %c0_11] : memref<8x128xf32, #tpu.memory_space<vmem>>, vector<8x128xf32>
      tpu.vector_store %arg3[%c0_10, %c0_11], %19 {strides = array<i32>} : memref<8x128xf32, #tpu.memory_space<vmem>>, vector<8x128xf32>,
    } else {
    }
    %c0 = arith.constant 0 : index
    %c0_1 = arith.constant 0 : index
    %3 = vector.load %arg2[%c0, %c0_1] : memref<8x128xf32, #tpu.memory_space<vmem>>, vector<8x128xf32>
    %cst = arith.constant 0.000000e+00 : f32
    %4 = vector.broadcast %cst : f32 to vector<8x128xf32>
    %5 = arith.maximumf %3, %4 : vector<8x128xf32>
    %6 = math.absf %3 : vector<8x128xf32>
    %cst_2 = arith.constant 0.000000e+00 : f32
    %7 = vector.broadcast %cst_2 : f32 to vector<8x128xf32>
    %8 = arith.subf %7, %6 : vector<8x128xf32>
    %9 = math.exp %8 : vector<8x128xf32>
    %cst_3 = arith.constant 1.000000e+00 : f32
    %10 = vector.broadcast %cst_3 : f32 to vector<8x128xf32>
    %11 = arith.addf %10, %9 : vector<8x128xf32>
    %12 = math.log %11 : vector<8x128xf32>
    %13 = arith.addf %5, %12 : vector<8x128xf32>
    %c0_4 = arith.constant 0 : index
    %c0_5 = arith.constant 0 : index
    %14 = vector.load %arg3[%c0_4, %c0_5] : memref<8x128xf32, #tpu.memory_space<vmem>>, vector<8x128xf32>
    %15 = vector.shape_cast %13 : vector<8x128xf32> to vector<1x8x128xf32>
    %cst_6 = arith.constant dense<0.000000e+00> : vector<8x128xf32>
    %16 = vector.multi_reduction <add>, %15, %cst_6 [0] : vector<1x8x128xf32> to vector<8x128xf32>
    %17 = arith.addf %14, %16 : vector<8x128xf32>
    %c0_7 = arith.constant 0 : index
    %c0_8 = arith.constant 0 : index
    %18 = vector.load %arg3[%c0_7, %c0_8] : memref<8x128xf32, #tpu.memory_space<vmem>>, vector<8x128xf32>
    tpu.vector_store %arg3[%c0_7, %c0_8], %17 {strides = array<i32>} : memref<8x128xf32, #tpu.memory_space<vmem>>, vector<8x128xf32>,
    return
  }
  func.func @transform_0(%arg0: i32, %arg1: i32) -> (i32, i32) {
    %c1_i32 = arith.constant 1 : i32
    %0 = arith.muli %arg0, %c1_i32 : i32
    %1 = arith.addi %0, %arg1 : i32
    %c0_i32 = arith.constant 0 : i32
    %c0_i32_0 = arith.constant 0 : i32
    return %1, %c0_i32 : i32, i32
  }
  func.func @transform_1(%arg0: i32, %arg1: i32) -> (i32, i32) {
    %c0_i32 = arith.constant 0 : i32
    %c0_i32_0 = arith.constant 0 : i32
    return %arg0, %c0_i32 : i32, i32
  }
}

</mosaic_0001>

<bundles_post_ra>
// kernel: tpu_custom_call.1
= control target key start
LH: loop header
LB: loop body
LE: loop exit
PB: predicated region body
PF: predicated region fallthrough
CT: control target
= control target key end

     0   :  { %6 = vsyncpa [#allocation3], 0  ;;  %s588_s0 = inlined_call_operand.hbm [shape: f32[16,128], index: 0, kind: input, shape index: {}]   ;;  %s589_s1 = inlined_call_operand.hbm [shape: f32[16,128], index: 1, kind: output, shape index: {}]  }
   0x1   :  { %8 = vsyncpa [#allocation3 + $0x1], 0 }
   0x2   :  { %9 = vsyncpa [#allocation4], 0 }
   0x3   :  { %11 = vsyncpa [#allocation4 + $0x1], 0  ;;  %s468_s6 = smov 0   ;;  %s470_s7 = smov 0  }
   0x4   :  { %s472_s8 = smov 0   ;;  %s474_s9 = smov 0  }
   0x5   :  { %s476_s10 = smov 0   ;;  %s478_s11 = smov 0  }
   0x6 LB: > { %s264_s12 = sadd.s32 4294967295, %s456_s11   ;;  %s265_s13 = sadd.s32 4294967294, %s456_s11   ;;  %s456_s11 = sphi %s478_s11, %s17_s11   ;;  %s452_s10 = sphi %s476_s10, %s598_s10   ;;  %s448_s9 = sphi %s474_s9, %s597_s9   ;;  %s444_s8 = sphi %s472_s8, %s596_s8   ;;  %s440_s7 = sphi %s470_s7, %s595_s7   ;;  %s436_s6 = sphi %s468_s6, %s594_s6  }
   0x7   : > { %s29_s14 = sadd.s32 1, %s452_s10  ;;  %s38_s15 = sadd.s32 1, %s444_s8 }
   0x8   : > { %p31_p0 = scmp.ge.s32.totalorder %s29_s14, 2  ;;  %p45_p1 = scmp.ne.s32.totalorder %s444_s8, %s440_s7 }
   0x9   : > { %p46_p2 = scmp.eq.s32.totalorder %s456_s11, 0  ;;  %p51_p3 = scmp.ne.s32.totalorder %s440_s7, %s436_s6 }
   0xa   : > { %s600_s14 = smov (%p31_p0, %s29_s14), 0  ;;  %p52_p5 = scmp.eq.s32.totalorder %s264_s12, 0 }
   0xb   : > { %p509_p4 = por %p46_p2, %p45_p1  ;;  %s35_s17 = ssub.s32 %s452_s10, %s600_s14 }
   0xc   : > { %p75_p6 = scmp.eq.s32.totalorder %s264_s12, 1  ;;  %p36_p7 = scmp.eq.s32.totalorder %s35_s17, 0 }
   0xd   : > { %p515_p8 = por %p52_p5, %p51_p3  ;;  %p81_p10 = scmp.eq.s32.totalorder %s265_s13, 1 }
   0xe   : > { %p519_p9 = por %p75_p6, %p45_p1  ;;  %p267_p12 = scmp.ge.s32.totalorder %s456_s11, 2 }
   0xf   : > { %s524_s20 = scalar_select %p36_p7, %s444_s8, %s38_s15  }
  0x10   : > { %p526_p11 = por %p81_p10, %p51_p3  ;;  %p289_p13 = scmp.lt.s32.totalorder %s456_s11, 2 }
  0x11   : > { %s101_s22 = sand.u32 1, %s444_s8   ;;  %s269_s24 = sshll.u32 %s452_s10, 3 }
  0x12   : > { %s268_s23 = sshll.u32 %s101_s22, 3  ;;  %s110_s27 = scalar_lea.hbm %s588_s0, %s269_s24 }
  0x13   : > { %s105_s28 = scalar_lea.vmem [#allocation2], %s268_s23  ;;  %s112_s30 = sshll.u32 %s110_s27, 4  ;;  %s113_s30 = int_to_ptr.hbm [resolvable:$true] %s112_s30 }
  0x14   : > { %s114_s29 = sshll.u32 %s105_s28, 4  ;;  %p282_p0 = pnand %p289_p13, %p509_p4  ;;  %s115_s29 = int_to_ptr.vmem [resolvable:$true] %s114_s29 }
  0x15   : > { %p270_p1 = scmp.ge.s32.totalorder %s456_s11, 1  ;;  %p119_p2 = scmp.lt.s32.totalorder %s456_s11, 3 }
  0x16   : > { %s102_s2 = scalar_lea.sflag [#allocation3], %s101_s22 }
  0x17   : > { %284 = dma.hbm_to_vmem [thread:$0]  (!%p282_p0), %s113_s30, 128, %s115_s29, %s102_s2  }
  0x18   : > { %p120_p3 = pnand %p270_p1, %p119_p2 }
  0x19   : > { %s542_s3 = sand.u32 (!%p120_p3), 1, %s440_s7  }
  0x1a   : > { %123 = sbr.rel (%p120_p3) target bundleno = 62 (0x3e), region = 24  ;;  %s271_s4 = sshll.u32 (!%p120_p3), %s542_s3, 3 }
  0x1b   : > { %s126_s5 = scalar_lea.sflag (!%p120_p3), [#allocation3], %s542_s3  ;;  %s129_s12 = scalar_lea.vmem (!%p120_p3), [#allocation2], %s271_s4 }
  0x1f   : > { %427 = dma.done.wait (%p515_p8), %s126_s5, 128  }
  0x20   : > { %429 = vsyncadd (%p515_p8), %s126_s5, 4294967168  ;;  %v155_v0 = vld [vmem:[%s129_s12] sm:$0xff]  ;;  %s274_s13 = sshll.u32 %s448_s9, 3  ;;  %s148_s18 = scalar_lea.vmem [#allocation5], %s271_s4 }
  0x21   : > { %v157_v1 = vand.u32 2147483647, %v155_v0  ;;  %v156_v6 = vmax.f32 %v155_v0, 0.0  ;;  %s180_s17 = scalar_lea.hbm %s589_s1, %s274_s13  ;;  %s182_s22 = sshll.u32 %s148_s18, 4  ;;  %s183_s22 = int_to_ptr.vmem [resolvable:$true] %s182_s22 }
  0x22   : > { %s184_s23 = sshll.u32 %s180_s17, 4  ;;  %s170_s24 = scalar_lea.sflag [#allocation4], %s542_s3  ;;  %s185_s23 = int_to_ptr.hbm [resolvable:$true] %s184_s23 }
  0x23   : > { %v158_v2 = vsub.f32 0.0, %v157_v1  ;;  %s388_s25 = sshra.s32 %s185_s23, 4  ;;  %s394_s28 = scalar_lea.hbm %s589_s1, 16  ;;  %s389_s25 = int_to_ptr.hbm [resolvable:$true] %s388_s25 }
  0x24   : > { %s390_s26 = scalar_lea.hbm %s389_s25, 8  ;;  %p395_p7 = scmp.lt.s32.totalorder %s389_s25, %s589_s1 }
  0x25   : > { %v159_v3 = vmul.f32 1.442695, %v158_v2  ;;  %p391_p4 = scmp.ne.s32.totalorder %s389_s25, %s390_s26  ;;  %p396_p8 = scmp.lt.s32.totalorder %s394_s28, %s390_s26 }
  0x27   : > { %340 = vpow2.f32 %v159_v3  ;;  %p392_p5 = pnand %p391_p4, %p519_p9  ;;  %p397_p10 = por %p396_p8, %p395_p7 }
  0x29   : > { %p393_p6 = pneg %p392_p5 }
  0x2b   : > { %p398_p13 = pnand %p397_p10, %p393_p6 }
  0x2d   : > { %v341_v4 = vpop.eup %340 }
  0x2e   : > { %v161_v5 = vadd.f32 1.0, %v341_v4 }
  0x30   : > { %342 = vlog2.f32 %v161_v5 }
  0x36   : > { %v343_v7 = vpop.eup %342 }
  0x37   : > { %v163_v8 = vmul.f32 0.6931472, %v343_v7 }
  0x39   : > { %v164_v9 = vadd.f32 %v163_v8, %v156_v6 }
  0x3b   : > { %168 = vst [vmem:[%s148_s18] sm:$0xff] %v164_v9 }
  0x3c   : > { %401 = shalt.err (!%p398_p13)
}
  0x3d   : > { %279 = dma.vmem_to_hbm [thread:$0]  (%p519_p9), %s183_s22, 128, %s185_s23, %s170_s24  }
  0x3e PF: > { %s196_s2 = sand.u32 1, %s436_s6   ;;  %p286_p0 = pnand %p267_p12, %p526_p11 }
  0x3f   : > { %s197_s3 = scalar_lea.sflag [#allocation4], %s196_s2 }
  0x40   : > { %p287_p1 = pneg %p286_p0 }
  0x42   : > { %431 = dma.done.wait (%p287_p1), %s197_s3, 128  }
  0x43   : > { %433 = vsyncadd (%p287_p1), %s197_s3, 4294967168  ;;  %s17_s11 = sadd.s32 1, %s456_s11   ;;  %s594_s6 = smov %s440_s7 }
  0x44   : > { %p14_p2 = scmp.ge.s32.totalorder %s17_s11, 4   ;;  %s595_s7 = smov %s444_s8 }
  0x45   : > { %s596_s8 = smov %s524_s20  ;;  %s597_s9 = smov %s452_s10 }
  0x46   : > { %s598_s10 = smov %s600_s14  ;;  %16 = sbr.rel (!%p14_p2) target bundleno = 6 (0x6), region = 73 }
  0x4b   :  { %203 = vsyncpa [#allocation3], 1 }
  0x4c   :  { %205 = vsyncpa [#allocation3 + $0x1], 1 }
  0x4d   :  { %206 = vsyncpa [#allocation4], 1 }
  0x4e   :  { %208 = vsyncpa [#allocation4 + $0x1], 1 }

</bundles_post_ra>
